<compile_context>
chip_gen: v5e
topology: v5e:2x2
jax: 0.10.0
libtpu: 0.0.40
codegen_flags: <defaults>
</compile_context>

<pallas_src>
import math

import jax
import jax.numpy as jnp
from jax.experimental import pallas as pl
from jax.experimental.pallas import tpu as pltpu


# ---------------------------------------------------------------------------
# Generation-aware VMEM sizing
# ---------------------------------------------------------------------------

def _physical_vmem_bytes():
    """Per-TensorCore VMEM capacity; conservative 64 MiB (v7x) if unknown."""
    try:
        info = pltpu.get_tpu_info()
        for attr in ("vmem_capacity_bytes", "vmem_bytes", "vmem_size_bytes"):
            v = getattr(info, attr, None)
            if v:
                return int(v)
    except Exception:
        pass
    return 64 << 20


def _vmem_limit_bytes():
    """Scoped-VMEM limit for Mosaic: ~75% of physical with >=16 MiB headroom.
    -> ~48 MiB on 64 MiB parts (v7x), ~96 MiB on 128 MiB parts (v5e/v6e)."""
    phys = _physical_vmem_bytes()
    return max(32 << 20, min(int(phys * 0.75), phys - (16 << 20)))


def _choose_batch_tile(B, bytes_per_row, resident_bytes, vmem_limit, sublane):
    """Batch-row tile: multiple of `sublane`, <= B, sized so the pipelined row
    tiles plus the resident weight fit `vmem_limit`.  Prefers a tile dividing
    B evenly but never shrinks below ~half the cap — a ragged tail (Pallas
    masks OOB output rows) beats collapsing to tiny tiles."""
    if B <= sublane:
        return B
    row_cap = 1024 if vmem_limit <= (56 << 20) else 2048
    avail = max(vmem_limit - resident_bytes, sublane * bytes_per_row)
    cap = max(sublane, min(B, row_cap, avail // bytes_per_row))
    tb = max(sublane, (cap // sublane) * sublane)
    floor = max(sublane, ((tb // 2) // sublane) * sublane)
    t = tb
    while t >= floor:
        if B % t == 0:
            return t
        t -= sublane
    return tb


def _choose_k_tile(din, dout, itemsize, budget_bytes, override=None):
    """Reduction (din) tile for the blocked path: full din if the
    double-buffered weight block fits the budget, else the largest
    128-multiple divisor of din that does."""
    if override is not None:
        assert din % override == 0 and override % 128 == 0
        return override
    if 2 * din * dout * itemsize <= budget_bytes:
        return din
    for t in range(din, 127, -128):
        if din % t == 0 and 2 * t * dout * itemsize <= budget_bytes:
            return t
    return 128


# ---------------------------------------------------------------------------
# Kernels (operands are already in compute dtype: cast happens at the boundary)
# ---------------------------------------------------------------------------

def _matmul_bias_kernel(x_ref, w_ref, b_ref, o_ref):
    # x_ref: (TB, Din), w_ref: (Din, TN), b_ref: (1, TN), o_ref: (TB, TN)
    acc = jnp.dot(x_ref[...], w_ref[...], preferred_element_type=jnp.float32)
    o_ref[...] = (acc + b_ref[...].astype(jnp.float32)).astype(o_ref.dtype)


def _matmul_bias_acc_kernel(x_ref, w_ref, b_ref, o_ref, acc_ref):
    # K-tiled blocked path: grid = (k, B-tiles, K-tiles); reduction axis last.
    kk = pl.program_id(2)

    @pl.when(kk == 0)
    def _():
        acc_ref[...] = jnp.zeros_like(acc_ref)

    acc_ref[...] += jnp.dot(x_ref[...], w_ref[...],
                            preferred_element_type=jnp.float32)

    @pl.when(kk == pl.num_programs(2) - 1)
    def _():
        o_ref[...] = (acc_ref[...] + b_ref[...].astype(jnp.float32)
                      ).astype(o_ref.dtype)


# ---------------------------------------------------------------------------
# Parameter preparation (call once per parameter update, cache the result)
# ---------------------------------------------------------------------------

def prepare_block_linear(w, b, k, *, compute_dtype=None):
    """Precompute operand layouts once (cached across forward calls).

    w: (k, ninp//k, nout//k), b: (1, nout).
    compute_dtype: None (matmul in w.dtype) or jnp.bfloat16 — the cast happens
    HERE, at the boundary, so the kernel DMAs bf16 operands (half the HBM
    traffic); accumulation is always f32.
    """
    kw, din, dout = w.shape
    assert kw == k
    ninp, nout = k * din, k * dout
    op_dtype = jnp.dtype(compute_dtype) if compute_dtype is not None \
        else jnp.dtype(w.dtype)

    aligned = (din % 128 == 0) and (dout % 128 == 0)
    if aligned:
        return dict(mode="blocked", k=k, din=din, dout=dout, ninp=ninp,
                    nout=nout, op_dtype=op_dtype, w=w.astype(op_dtype), b=b)

    # Small / unaligned per-block dims: fuse the k tiny MXU-starved matmuls
    # into ONE well-shaped matmul against a block-diagonal (ninp, nout)
    # weight.  Built once here, not per forward call.
    # TODO(synk): for large k (weight bytes / MXU work inflated k-fold by the
    # zero blocks) pad din/dout up to (8,128) multiples and use the blocked
    # path instead of the block-diagonal fusion.
    eye = jnp.eye(k, dtype=w.dtype)
    w_bd = jnp.einsum("kde,kj->kdje", w, eye).reshape(ninp, nout)
    return dict(mode="fused", k=k, din=din, dout=dout, ninp=ninp, nout=nout,
                op_dtype=op_dtype, w=w_bd.astype(op_dtype), b=b)


# ---------------------------------------------------------------------------
# Forward
# ---------------------------------------------------------------------------

def block_linear_apply(x, params, *, k_tile=None, n_tile=None):
    """BlockLinear forward using prepared params (see prepare_block_linear)."""
    k, din, dout = params["k"], params["din"], params["dout"]
    ninp, nout = params["ninp"], params["nout"]
    op_dtype = params["op_dtype"]
    w_op, b = params["w"], params["b"]

    *other, last = x.shape
    assert last == ninp
    B = 1
    for s in other:
        B *= s
    out_dtype = x.dtype
    # Contiguous reshape (no HBM copy) + boundary cast: the kernel's DMAs move
    # op_dtype bytes.  In a real model the activation is already bf16.
    x2 = x.reshape(B, ninp).astype(op_dtype)

    its_op = jnp.dtype(op_dtype).itemsize
    its_out = jnp.dtype(out_dtype).itemsize
    sublane = 16 if its_op == 2 else 8
    vmem_limit = _vmem_limit_bytes()
    scratch = []

    if params["mode"] == "blocked":
        # grid = (k, B-tiles[, K-tiles]); k outermost keeps each per-block
        # weight slice VMEM-resident across all inner batch tiles.
        tk = _choose_k_tile(din, dout, its_op, vmem_limit // 4, override=k_tile)
        k_steps = din // tk
        resident = 2 * tk * dout * its_op + 2 * dout * 4        # weight + bias
        row_bytes = 2 * tk * its_op + 2 * dout * its_out        # x + out rows
        if k_steps > 1:
            row_bytes += dout * 4                               # f32 acc rows
        TB = _choose_batch_tile(B, row_bytes, resident, vmem_limit, sublane)
        # Small / odd k: let the big batch axis be the one megacore shards.
        k_sem = "arbitrary" if (k < 8 or k % 2 == 1) else "parallel"

        if k_steps == 1:
            grid = (k, pl.cdiv(B, TB))
            in_specs = [
                pl.BlockSpec((TB, din), lambda ik, ib: (ib, ik)),
                pl.BlockSpec((pl.Squeezed(), din, dout),
                             lambda ik, ib: (ik, 0, 0)),
                pl.BlockSpec((1, dout), lambda ik, ib: (0, ik)),
            ]
            out_spec = pl.BlockSpec((TB, dout), lambda ik, ib: (ib, ik))
            kernel = _matmul_bias_kernel
            dim_sem = (k_sem, "parallel")
        else:
            grid = (k, pl.cdiv(B, TB), k_steps)
            in_specs = [
                pl.BlockSpec((TB, tk),
                             lambda ik, ib, kk: (ib, ik * k_steps + kk)),
                pl.BlockSpec((pl.Squeezed(), tk, dout),
                             lambda ik, ib, kk: (ik, kk, 0)),
                pl.BlockSpec((1, dout), lambda ik, ib, kk: (0, ik)),
            ]
            out_spec = pl.BlockSpec((TB, dout), lambda ik, ib, kk: (ib, ik))
            scratch = [pltpu.VMEM((TB, dout), jnp.float32)]
            kernel = _matmul_bias_acc_kernel
            dim_sem = (k_sem, "parallel", "arbitrary")

        flops = 2 * B * k * din * dout
        bytes_acc = (B * ninp * its_op + k * din * dout * its_op
                     + nout * 4 + B * nout * its_out)
    else:
        # Fused block-diagonal path; tile nout in lane-dense 128-multiples if
        # the resident (ninp, TN) slab would exceed the VMEM budget (v7x).
        tn = n_tile
        if tn is None:
            if nout <= 128 or 2 * ninp * nout * its_op <= vmem_limit // 3:
                tn = nout
            else:
                tn = max(128, ((vmem_limit // 3) // (2 * ninp * its_op)
                               // 128) * 128)
                tn = min(tn, nout)
        n_steps = pl.cdiv(nout, tn)
        resident = 2 * ninp * tn * its_op + 2 * tn * 4
        row_bytes = 2 * ninp * its_op + 2 * tn * its_out
        TB = _choose_batch_tile(B, row_bytes, resident, vmem_limit, sublane)

        grid = (n_steps, pl.cdiv(B, TB))
        in_specs = [
            pl.BlockSpec((TB, ninp), lambda jn, ib: (ib, 0)),
            pl.BlockSpec((ninp, tn), lambda jn, ib: (0, jn)),
            pl.BlockSpec((1, tn), lambda jn, ib: (0, jn)),
        ]
        out_spec = pl.BlockSpec((TB, tn), lambda jn, ib: (ib, jn))
        kernel = _matmul_bias_kernel
        dim_sem = ("arbitrary", "parallel")

        flops = 2 * B * ninp * nout
        bytes_acc = (B * ninp * its_op + ninp * nout * its_op
                     + nout * 4 + B * nout * its_out)

    out2 = pl.pallas_call(
        kernel,
        out_shape=jax.ShapeDtypeStruct((B, nout), out_dtype),
        grid_spec=pltpu.PrefetchScalarGridSpec(
            num_scalar_prefetch=0,
            grid=grid,
            in_specs=in_specs,
            out_specs=out_spec,
            scratch_shapes=scratch,
        ),
        compiler_params=pltpu.CompilerParams(
            dimension_semantics=dim_sem,
            vmem_limit_bytes=vmem_limit,
        ),
        cost_estimate=pl.CostEstimate(
            flops=int(flops), transcendentals=0,
            bytes_accessed=int(bytes_acc)),
    )(x2, w_op, b)

    return out2.reshape(*other, nout)      # contiguous reshape: no HBM copy


def block_linear(x, w, b, k, *, compute_dtype=None, k_tile=None, n_tile=None):
    """One-shot convenience wrapper.  For repeated forwards, call
    prepare_block_linear() once per parameter update and reuse the result with
    block_linear_apply() (caches the bf16 cast / block-diagonal weight)."""
    params = prepare_block_linear(w, b, k, compute_dtype=compute_dtype)
    return block_linear_apply(x, params, k_tile=k_tile, n_tile=n_tile)


# ---------------------------------------------------------------------------
# Param init + pure-JAX reference (mirrors the PyTorch module)
# ---------------------------------------------------------------------------

def init_block_linear_params(key, ninp, nout, k):
    """xavier_uniform_ for w (PyTorch fan convention for 3-D tensors:
    fan_in = din*dout, fan_out = k*dout), zeros for b."""
    din, dout = ninp // k, nout // k
    fan_in = din * dout
    fan_out = k * dout
    limit = math.sqrt(6.0 / (fan_in + fan_out))
    w = jax.random.uniform(key, (k, din, dout), jnp.float32,
                           minval=-limit, maxval=limit)
    b = jnp.zeros((1, nout), jnp.float32)
    return w, b


def block_linear_reference(x, w, b, k):
    """Pure-JAX reference mirroring the PyTorch forward exactly."""
    *other, _ = x.shape
    B = 1
    for s in other:
        B *= s
    xr = x.reshape(B, k, -1).transpose(1, 0, 2)    # (k, B, din)
    y = jnp.einsum("kbd,kde->kbe", xr, w,
                   precision=jax.lax.Precision.HIGHEST)
    y = y.transpose(1, 0, 2).reshape(*other, -1)
    return y + b


if __name__ == "__main__":
    key = jax.random.PRNGKey(0)
    ks = jax.random.split(key, 8)

    # Case 1: tiny, unaligned per-block dims (din=dout=8) -> fused path.
    ninp, nout, kb = 32, 32, 4
    w1, _ = init_block_linear_params(ks[0], ninp, nout, kb)
    b1 = 0.1 * jax.random.normal(ks[1], (1, nout), dtype=jnp.float32)
    x1 = jax.random.normal(ks[2], (2, 8, ninp), dtype=jnp.float32)
    out1 = jax.block_until_ready(block_linear(x1, w1, b1, kb))
    ref1 = block_linear_reference(x1, w1, b1, kb)
    assert out1.shape == (2, 8, nout)
    assert jnp.allclose(out1, ref1, atol=1e-4, rtol=1e-4)

    # Case 2: 128-aligned per-block dims -> blocked path (weight resident
    # across batch tiles, native-layout lane-dense tiles), f32.
    ninp2, nout2, kb2 = 512, 512, 4
    w2, _ = init_block_linear_params(ks[3], ninp2, nout2, kb2)
    b2 = 0.1 * jax.random.normal(ks[4], (1, nout2), dtype=jnp.float32)
    x2 = jax.random.normal(ks[5], (2, 8, ninp2), dtype=jnp.float32)
    p2 = prepare_block_linear(w2, b2, kb2)
    out2 = jax.block_until_ready(block_linear_apply(x2, p2))
    ref2 = block_linear_reference(x2, w2, b2, kb2)
    assert out2.shape == (2, 8, nout2)
    assert jnp.allclose(out2, ref2, atol=2e-4, rtol=2e-4)

    # Case 3: bf16 operands cast at the boundary (prepare step + wrapper),
    # f32 accumulation — halves operand HBM traffic on v5e/v6e/v7x.
    p2b = prepare_block_linear(w2, b2, kb2, compute_dtype=jnp.bfloat16)
    out3 = jax.block_until_ready(block_linear_apply(x2, p2b))
    assert jnp.allclose(out3, ref2, atol=1e-2, rtol=1e-2)

    # Case 4: K-tiled blocked path (din reduction grid axis + f32 VMEM
    # accumulator), forced via k_tile at small shapes to exercise the
    # large-per-block-weight / v7x-VMEM path.
    ninp4, nout4, kb4 = 512, 256, 2          # din=256, dout=128
    w4, _ = init_block_linear_params(ks[6], ninp4, nout4, kb4)
    b4 = 0.1 * jax.random.normal(ks[7], (1, nout4), dtype=jnp.float32)
    x4 = jax.random.normal(ks[2], (2, 8, ninp4), dtype=jnp.float32)
    out4 = jax.block_until_ready(block_linear(x4, w4, b4, kb4, k_tile=128))
    ref4 = block_linear_reference(x4, w4, b4, kb4)
    assert out4.shape == (2, 8, nout4)
    assert jnp.allclose(out4, ref4, atol=1e-3, rtol=1e-3)

    # Case 5: fused path with nout tiling (lane-dense 128-wide weight/output
    # tiles), forced via n_tile; din=dout=64 is unaligned -> fused, nout=256.
    ninp5, nout5, kb5 = 256, 256, 4
    w5, _ = init_block_linear_params(ks[0], ninp5, nout5, kb5)
    b5 = 0.1 * jax.random.normal(ks[1], (1, nout5), dtype=jnp.float32)
    x5 = jax.random.normal(ks[3], (2, 8, ninp5), dtype=jnp.float32)
    out5 = jax.block_until_ready(block_linear(x5, w5, b5, kb5, n_tile=128))
    ref5 = block_linear_reference(x5, w5, b5, kb5)
    assert out5.shape == (2, 8, nout5)
    assert jnp.allclose(out5, ref5, atol=1e-3, rtol=1e-3)

    print("KERNEL_OK")
</pallas_src>

<mosaic_0001>
module attributes {stable_mosaic.version = 11 : i64} {
  func.func @_matmul_bias_kernel(%arg0: i32, %arg1: i32, %arg2: memref<16x32xf32, #tpu.memory_space<vmem>>, %arg3: memref<32x32xf32, #tpu.memory_space<vmem>>, %arg4: memref<1x32xf32, #tpu.memory_space<vmem>>, %arg5: memref<16x32xf32, #tpu.memory_space<vmem>>) attributes {dimension_semantics = [#tpu.dimension_semantics<arbitrary>, #tpu.dimension_semantics<parallel>], iteration_bounds = array<i64: 1, 1>, scalar_prefetch = 0 : i64, scratch_operands = 0 : i64, tpu.core_type = #tpu.core_type<tc>, window_params = [{transform_indices = @transform_0, window_bounds = array<i64: 16, 32>}, {transform_indices = @transform_1, window_bounds = array<i64: 32, 32>}, {transform_indices = @transform_2, window_bounds = array<i64: 1, 32>}, {transform_indices = @transform_3, window_bounds = array<i64: 16, 32>}]} {
    %c0 = arith.constant 0 : index
    %c0_0 = arith.constant 0 : index
    %0 = vector.load %arg2[%c0, %c0_0] : memref<16x32xf32, #tpu.memory_space<vmem>>, vector<16x32xf32>
    %c0_1 = arith.constant 0 : index
    %c0_2 = arith.constant 0 : index
    %1 = vector.load %arg3[%c0_1, %c0_2] : memref<32x32xf32, #tpu.memory_space<vmem>>, vector<32x32xf32>
    %cst = arith.constant dense<0.000000e+00> : vector<16x32xf32>
    %2 = tpu.matmul %0, %1, %cst {dimension_numbers = #tpu.dot_dimension_numbers<[1], [0], [0], [1], [0, 0, 1, 1], [], []>} : vector<16x32xf32>, vector<32x32xf32>, vector<16x32xf32> -> vector<16x32xf32>
    %c0_3 = arith.constant 0 : index
    %c0_4 = arith.constant 0 : index
    %3 = vector.load %arg4[%c0_3, %c0_4] : memref<1x32xf32, #tpu.memory_space<vmem>>, vector<1x32xf32>
    %4 = vector.broadcast %3 : vector<1x32xf32> to vector<16x32xf32>
    %5 = arith.addf %2, %4 : vector<16x32xf32>
    %c0_5 = arith.constant 0 : index
    %c0_6 = arith.constant 0 : index
    %6 = vector.load %arg5[%c0_5, %c0_6] : memref<16x32xf32, #tpu.memory_space<vmem>>, vector<16x32xf32>
    tpu.vector_store %arg5[%c0_5, %c0_6], %5 {strides = array<i32>} : memref<16x32xf32, #tpu.memory_space<vmem>>, vector<16x32xf32>,
    return
  }
  func.func @transform_0(%arg0: i32, %arg1: i32) -> (i32, i32) {
    %c0_i32 = arith.constant 0 : i32
    %c0_i32_0 = arith.constant 0 : i32
    return %arg1, %c0_i32 : i32, i32
  }
  func.func @transform_1(%arg0: i32, %arg1: i32) -> (i32, i32) {
    %c0_i32 = arith.constant 0 : i32
    %c0_i32_0 = arith.constant 0 : i32
    return %c0_i32, %arg0 : i32, i32
  }
  func.func @transform_2(%arg0: i32, %arg1: i32) -> (i32, i32) {
    %c0_i32 = arith.constant 0 : i32
    %c0_i32_0 = arith.constant 0 : i32
    return %c0_i32, %arg0 : i32, i32
  }
  func.func @transform_3(%arg0: i32, %arg1: i32) -> (i32, i32) {
    %c0_i32 = arith.constant 0 : i32
    return %arg1, %arg0 : i32, i32
  }
}

</mosaic_0001>

<bundles_post_ra>
// kernel: tpu_custom_call.1
= control target key start
LH: loop header
LB: loop body
LE: loop exit
PB: predicated region body
PF: predicated region fallthrough
CT: control target
= control target key end

     0   :  { %8 = vsyncpa [#allocation3], 0  ;;  %s249_s0 = inlined_call_operand.hbm [shape: f32[16,32], index: 0, kind: input, shape index: {}]   ;;  %s250_s1 = inlined_call_operand.hbm [shape: f32[32,32], index: 1, kind: input, shape index: {}]   ;;  %s251_s2 = inlined_call_operand.vmem [shape: f32[1,32], index: 2, kind: input, shape index: {}]   ;;  %s252_s3 = inlined_call_operand.hbm [shape: f32[16,32], index: 3, kind: output, shape index: {}]  }
   0x1   :  { %9 = vsyncpa [#allocation6], 0 }
   0x2   :  { %10 = vsyncpa [#allocation4], 0  ;;  %s15_s14 = sshll.u32 %s249_s0, 4  ;;  %s199_s15 = smov [#allocation2]   ;;  %s16_s14 = int_to_ptr.hbm [resolvable:$true] %s15_s14 }
   0x3   :  { %s17_s16 = sshll.u32 %s199_s15, 4  ;;  %s28_s19 = sshll.u32 %s250_s1, 4  ;;  %s18_s16 = int_to_ptr.vmem [resolvable:$true] %s17_s16  ;;  %s29_s19 = int_to_ptr.hbm [resolvable:$true] %s28_s19 }
   0x4   :  { %s200_s20 = smov 128   ;;  %s201_s21 = smov 8  }
   0x5   :  { %23 = dma.hbm_to_vmem [thread:$0]  %s16_s14, 256, %s18_s16, [#allocation3], %s200_s20, %s200_s20, %s201_s21  }
   0x6   :  { %s202_s22 = smov [#allocation5]  }
   0x7   :  { %s30_s23 = sshll.u32 %s202_s22, 4  ;;  %s31_s23 = int_to_ptr.vmem [resolvable:$true] %s30_s23 }
   0x8   :  { %36 = dma.hbm_to_vmem [thread:$0]  %s29_s19, 512, %s31_s23, [#allocation6], %s200_s20, %s200_s20, %s201_s21  }
   0x9   :  { %193 = dma.done.wait [#allocation3], 256  }
   0xa   :  { %194 = vsyncadd [#allocation3], 4294967040 }
   0xb   :  { %195 = dma.done.wait [#allocation6], 512  }
   0xc   :  { %196 = vsyncadd [#allocation6], 4294966784  ;;  %v52_v0 = vld [vmem:[#allocation5 + $0x18] sm:$0xff]  ;;  %v51_v1 = vld [vmem:[#allocation5 + $0x10] sm:$0xff]  ;;  %vm57_vm0 = vcmask 261120   ;;  %s203_s24 = smov [#allocation7]  }
   0xd   :  { %76 = vmatpush.msra.mxu0 %v52_v0  ;;  %111 = vmatpush.msra.mxu1 %v52_v0  ;;  %v50_v2 = vld [vmem:[#allocation5 + $0x8] sm:$0xff]  ;;  %v49_v3 = vld [vmem:[#allocation5] sm:$0xff]  ;;  %v47_v4 = vld [vmem:[#allocation2] sm:$0xff]  ;;  %s93_s25 = sshll.u32 %s203_s24, 4  ;;  %s95_s28 = sshll.u32 %s252_s3, 4  ;;  %s94_s25 = int_to_ptr.vmem [resolvable:$true] %s93_s25  ;;  %s96_s28 = int_to_ptr.hbm [resolvable:$true] %s95_s28 }
   0xe   :  { %v48_v5 = vld [vmem:[#allocation2 + $0x8] sm:$0xff]  ;;  %v120_v6 = vld [vmem:[%s251_s2] ss:$0 sm:$0xff] }
   0xf   :  { %77 = vmatpush.msra.mxu0 %v51_v1  ;;  %112 = vmatpush.msra.mxu1 %v51_v1 }
  0x11   :  { %78 = vmatpush.msra.mxu0 %v50_v2  ;;  %113 = vmatpush.msra.mxu1 %v50_v2 }
  0x13   :  { %79 = vmatpush.msra.mxu0 %v49_v3  ;;  %114 = vmatpush.msra.mxu1 %v49_v3 }
  0x14   :  { %109 = vmatmul.msk.f32.vlgmr.msra.gmra.mxu0 %vm57_vm0, %v47_v4  ;;  %110 = vmatmul.msk.f32.vlgmr.msra.gmra.mxu1 %vm57_vm0, %v48_v5 }
  0x91   :  { %v81_v7 = vpop.f32.mrf.mxu0  ;;  %v84_v8 = vpop.f32.mrf.mxu1 }
  0x92   :  { %v82_v9 = vadd.f32 %v120_v6, %v81_v7  ;;  %v85_v10 = vadd.f32 %v120_v6, %v84_v8 }
  0x94   :  { %87 = vst.msk [vmem:[#allocation7] sm:$0xff] %vm57_vm0, %v82_v9 }
  0x95   :  { %88 = vst.msk [vmem:[#allocation7 + $0x8] sm:$0xff] %vm57_vm0, %v85_v10 }
  0x96   :  { %101 = dma.vmem_to_hbm [thread:$0]  %s94_s25, 256, %s96_s28, [#allocation4], %s200_s20, %s200_s20, %s201_s21  }
  0x97   :  { %197 = dma.done.wait [#allocation4], 256  }
  0x98   :  { %198 = vsyncadd [#allocation4], 4294967040 }
  0x99   :  { %106 = vsyncpa [#allocation3], 1 }
  0x9a   :  { %107 = vsyncpa [#allocation6], 1 }
  0x9b   :  { %108 = vsyncpa [#allocation4], 1 }

</bundles_post_ra>
